<compile_context>
chip_gen: v6e
topology: v6e:2x2x1
jax: 0.10.0
libtpu: 0.0.40
codegen_flags: <defaults>
</compile_context>

<pallas_src>
import functools

import jax
import jax.numpy as jnp
from jax import lax
from jax.experimental import pallas as pl
from jax.experimental.pallas import tpu as pltpu

LANE = 128
SUBLANE = 8
MAX_BT = 2048          # max rows per grid step (VMEM stays tiny at this size)
SPLIT_THRESHOLD = 512  # batches >= this get 2 grid steps (v7x megacore)


def _round_up(n, m):
    return (n + m - 1) // m * m


def _default_compute_dtype():
    """bf16 MXU inputs on v5e (f32 matmuls are multi-pass there), f32 elsewhere."""
    try:
        kind = jax.devices()[0].device_kind.lower()
    except Exception:  # pragma: no cover - defensive
        kind = ""
    if "v5e" in kind or "v5 lite" in kind or "v5lite" in kind:
        return jnp.bfloat16
    return jnp.float32


def _choose_bt(batch):
    """Rows per grid step: 1 step for small batches, 2 even steps when large."""
    b_al = _round_up(batch, SUBLANE)
    if b_al <= MAX_BT:
        if b_al >= SPLIT_THRESHOLD:
            return _round_up(pl.cdiv(b_al, 2), SUBLANE)
        return b_al
    return MAX_BT


def _choose_chunks(bt):
    """In-kernel row chunks: >=128 rows each, multiple of 8, at most 4 chunks."""
    for n in (4, 2):
        rows = bt // n
        if bt % n == 0 and rows >= 128 and rows % SUBLANE == 0:
            return n
    return 1


def mlp_kernel(x_ref, w1_ref, b1_ref, w2_ref, b2_ref, w3_ref, b3_ref, o_ref,
               *, n_chunks):
    """Fused 3-layer MLP on one batch tile.

    Matmuls run on the MXU with f32 accumulation; bias add + tanh run in f32
    on the VPU/EUP.  Rows are processed in `n_chunks` unrolled chunks so the
    MXU work of one chunk overlaps the EUP tanh of the previous chunk.
    """
    cdt = w1_ref.dtype                       # MXU input dtype (f32 or bf16)
    rows = x_ref.shape[0] // n_chunks        # static chunk height (mult of 8)

    def body(c, carry):
        r0 = pl.multiple_of(c * rows, rows)
        x = x_ref[pl.ds(r0, rows), :].astype(cdt)
        h1 = jnp.tanh(
            jnp.dot(x, w1_ref[...], preferred_element_type=jnp.float32)
            + b1_ref[...]
        )
        h2 = jnp.tanh(
            jnp.dot(h1.astype(cdt), w2_ref[...], preferred_element_type=jnp.float32)
            + b2_ref[...]
        )
        y = (
            jnp.dot(h2.astype(cdt), w3_ref[...], preferred_element_type=jnp.float32)
            + b3_ref[...]
        )
        o_ref[pl.ds(r0, rows), :] = y.astype(o_ref.dtype)
        return carry

    lax.fori_loop(0, n_chunks, body, 0, unroll=True)


def prepare_params(params, compute_dtype=None):
    """One-time lane-padding + cast of weights/biases (do at init, reuse).

    params = (w1, b1, w2, b2, w3, b3) with weights stored as [in, out]
    (transposed from PyTorch's [out, in]) and biases as [1, out].
    Zero-padding the hidden/output columns is exact: tanh(0) = 0 and zero
    weight rows/columns contribute nothing.
    """
    if compute_dtype is None:
        compute_dtype = _default_compute_dtype()
    w1, b1, w2, b2, w3, b3 = params
    f_in, h1 = w1.shape
    h2 = w2.shape[1]
    f_out = w3.shape[1]
    h1p = _round_up(h1, LANE)
    h2p = _round_up(h2, LANE)
    fop = _round_up(f_out, LANE)

    return {
        "w1": jnp.pad(w1, ((0, 0), (0, h1p - h1))).astype(compute_dtype),
        "b1": jnp.pad(b1, ((0, 0), (0, h1p - h1))).astype(jnp.float32),
        "w2": jnp.pad(w2, ((0, h1p - h1), (0, h2p - h2))).astype(compute_dtype),
        "b2": jnp.pad(b2, ((0, 0), (0, h2p - h2))).astype(jnp.float32),
        "w3": jnp.pad(w3, ((0, h2p - h2), (0, fop - f_out))).astype(compute_dtype),
        "b3": jnp.pad(b3, ((0, 0), (0, fop - f_out))).astype(jnp.float32),
        "f_in": f_in,
        "f_out": f_out,
        "dims": (h1p, h2p, fop),
        "compute_dtype": jnp.dtype(compute_dtype),
    }


def mlp_forward(x, prepared):
    """Forward pass; `prepared` comes from prepare_params()."""
    B, f_in = x.shape
    assert f_in == prepared["f_in"]
    h1p, h2p, fop = prepared["dims"]
    f_out = prepared["f_out"]
    itemsize = prepared["compute_dtype"].itemsize

    bt = _choose_bt(B)
    grid = (pl.cdiv(B, bt),)
    n_chunks = _choose_chunks(bt)

    # Weights/biases: full-array blocks with a constant index_map -> resident
    # in VMEM across all grid steps.
    full = lambda shape: pl.BlockSpec(shape, lambda i: (0, 0))

    # VMEM footprint: double-buffered x/out tiles, resident weights/biases,
    # in-kernel h1/h2/y temporaries.  Generous 2x margin, floor 16 MiB, cap
    # 48 MiB (stays under v7x's 64 MiB physical VMEM).
    est = (
        2 * bt * f_in * 4
        + 2 * bt * fop * 4
        + 2 * (f_in * h1p + h1p * h2p + h2p * fop) * itemsize
        + 2 * (h1p + h2p + fop) * 4
        + bt * (h1p + h2p + fop) * 4
    )
    vmem_bytes = min(48 * 1024 * 1024, max(16 * 1024 * 1024, 2 * est))

    cost = pl.CostEstimate(
        flops=2 * B * (f_in * h1p + h1p * h2p + h2p * fop),
        transcendentals=B * (h1p + h2p),
        bytes_accessed=(
            x.size * 4
            + (prepared["w1"].size + prepared["w2"].size + prepared["w3"].size)
            * itemsize
            + (prepared["b1"].size + prepared["b2"].size + prepared["b3"].size) * 4
            + B * fop * 4
        ),
    )

    out = pl.pallas_call(
        functools.partial(mlp_kernel, n_chunks=n_chunks),
        out_shape=jax.ShapeDtypeStruct((B, fop), jnp.float32),
        grid_spec=pl.GridSpec(
            grid=grid,
            in_specs=[
                pl.BlockSpec((bt, f_in), lambda i: (i, 0)),  # x tile
                full((f_in, h1p)),  # w1
                full((1, h1p)),     # b1
                full((h1p, h2p)),   # w2
                full((1, h2p)),     # b2
                full((h2p, fop)),   # w3
                full((1, fop)),     # b3
            ],
            out_specs=pl.BlockSpec((bt, fop), lambda i: (i, 0)),
        ),
        compiler_params=pltpu.CompilerParams(
            dimension_semantics=("parallel",),
            vmem_limit_bytes=vmem_bytes,
        ),
        cost_estimate=cost,
    )(
        x,
        prepared["w1"], prepared["b1"],
        prepared["w2"], prepared["b2"],
        prepared["w3"], prepared["b3"],
    )

    # Only the real output columns (the 128-lane padding is sliced off lazily).
    return out[:, :f_out]


def init_params(key, f_in, h1, h2, f_out):
    """Deterministic init mimicking torch.nn.Linear default U(-1/sqrt(fan_in), +)."""
    ks = jax.random.split(key, 6)

    def linear(kw, kb, fan_in, fan_out):
        bound = 1.0 / jnp.sqrt(fan_in)
        w = jax.random.uniform(kw, (fan_in, fan_out), jnp.float32, -bound, bound)
        b = jax.random.uniform(kb, (1, fan_out), jnp.float32, -bound, bound)
        return w, b

    w1, b1 = linear(ks[0], ks[1], f_in, h1)
    w2, b2 = linear(ks[2], ks[3], h1, h2)
    w3, b3 = linear(ks[4], ks[5], h2, f_out)
    return (w1, b1, w2, b2, w3, b3)


def mlp_reference(x, params):
    w1, b1, w2, b2, w3, b3 = params
    h1 = jnp.tanh(x @ w1 + b1)
    h2 = jnp.tanh(h1 @ w2 + b2)
    return h2 @ w3 + b3


if __name__ == "__main__":
    # Shapes implied by the module: train_x.shape[1]=16 input features,
    # hidden layers 100 and 40, train_y.shape[1]=4 outputs.
    F_IN, H1, H2, F_OUT = 16, 100, 40, 4

    key = jax.random.PRNGKey(0)
    k_x, k_p = jax.random.split(key)
    params = init_params(k_p, F_IN, H1, H2, F_OUT)

    # One-time parameter prep (padding + casts hoisted out of the call path).
    prepared_f32 = prepare_params(params, compute_dtype=jnp.float32)
    prepared_bf16 = prepare_params(params, compute_dtype=jnp.bfloat16)

    # Batch large enough for 2 grid steps (256-row tiles, 2x128-row chunks
    # inside the kernel) -> exercises the parallel batch axis / megacore path.
    B = 512
    x = jax.random.normal(k_x, (B, F_IN), jnp.float32)
    ref = mlp_reference(x, params)

    # f32 compute: exact match against reference.
    out_f32 = jax.block_until_ready(mlp_forward(x, prepared_f32))
    assert out_f32.shape == (B, F_OUT)
    assert jnp.allclose(out_f32, ref, atol=1e-5, rtol=1e-5), "f32 mismatch vs reference"

    # bf16 MXU inputs + f32 accumulation: looser tolerance.
    out_bf16 = jax.block_until_ready(mlp_forward(x, prepared_bf16))
    assert out_bf16.shape == (B, F_OUT)
    assert jnp.allclose(out_bf16, ref, atol=5e-2, rtol=5e-2), "bf16 mismatch vs reference"

    # Ragged small batch (like the module's toy batches): no wrapper-side pad,
    # Pallas masks the partial block.
    x_small = jax.random.normal(jax.random.PRNGKey(1), (10, F_IN), jnp.float32)
    out_small = jax.block_until_ready(mlp_forward(x_small, prepared_f32))
    assert out_small.shape == (10, F_OUT)
    assert jnp.allclose(
        out_small, mlp_reference(x_small, params), atol=1e-5, rtol=1e-5
    ), "ragged-batch mismatch vs reference"

    # Ragged batch just above a tile boundary: 2 grid steps, partial last block.
    x_rag = jax.random.normal(jax.random.PRNGKey(2), (600, F_IN), jnp.float32)
    out_rag = jax.block_until_ready(mlp_forward(x_rag, prepared_f32))
    assert out_rag.shape == (600, F_OUT)
    assert jnp.allclose(
        out_rag, mlp_reference(x_rag, params), atol=1e-5, rtol=1e-5
    ), "partial-block mismatch vs reference"

    print("KERNEL_OK")
</pallas_src>

<mosaic_0001>
module attributes {stable_mosaic.version = 11 : i64} {
  func.func @mlp_kernel(%arg0: i32, %arg1: memref<256x16xf32, #tpu.memory_space<vmem>>, %arg2: memref<16x128xf32, #tpu.memory_space<vmem>>, %arg3: memref<1x128xf32, #tpu.memory_space<vmem>>, %arg4: memref<128x128xf32, #tpu.memory_space<vmem>>, %arg5: memref<1x128xf32, #tpu.memory_space<vmem>>, %arg6: memref<128x128xf32, #tpu.memory_space<vmem>>, %arg7: memref<1x128xf32, #tpu.memory_space<vmem>>, %arg8: memref<256x128xf32, #tpu.memory_space<vmem>>) attributes {dimension_semantics = [#tpu.dimension_semantics<parallel>], iteration_bounds = array<i64: 2>, scalar_prefetch = 0 : i64, scratch_operands = 0 : i64, tpu.core_type = #tpu.core_type<tc>, window_params = [{transform_indices = @transform_0, window_bounds = array<i64: 256, 16>}, {pipeline_mode = #tpu.pipeline_mode<synchronous>, transform_indices = @transform_1, window_bounds = array<i64: 16, 128>}, {pipeline_mode = #tpu.pipeline_mode<synchronous>, transform_indices = @transform_2, window_bounds = array<i64: 1, 128>}, {pipeline_mode = #tpu.pipeline_mode<synchronous>, transform_indices = @transform_3, window_bounds = array<i64: 128, 128>}, {pipeline_mode = #tpu.pipeline_mode<synchronous>, transform_indices = @transform_4, window_bounds = array<i64: 1, 128>}, {pipeline_mode = #tpu.pipeline_mode<synchronous>, transform_indices = @transform_5, window_bounds = array<i64: 128, 128>}, {pipeline_mode = #tpu.pipeline_mode<synchronous>, transform_indices = @transform_6, window_bounds = array<i64: 1, 128>}, {transform_indices = @transform_7, window_bounds = array<i64: 256, 128>}]} {
    %c0_i32 = arith.constant 0 : i32
    %c128_i32 = arith.constant 128 : i32
    %0 = arith.muli %c0_i32, %c128_i32 : i32
    %1 = tpu.assume_multiple %0, 128 : i32
    %2 = arith.index_cast %1 : i32 to index
    %c0 = arith.constant 0 : index
    %3 = vector.load %arg1[%2, %c0] : memref<256x16xf32, #tpu.memory_space<vmem>>, vector<128x16xf32>
    %c0_0 = arith.constant 0 : index
    %c0_1 = arith.constant 0 : index
    %4 = vector.load %arg2[%c0_0, %c0_1] : memref<16x128xf32, #tpu.memory_space<vmem>>, vector<16x128xf32>
    %cst = arith.constant dense<0.000000e+00> : vector<128x128xf32>
    %5 = tpu.matmul %3, %4, %cst {dimension_numbers = #tpu.dot_dimension_numbers<[1], [0], [0], [1], [0, 0, 1, 1], [], []>} : vector<128x16xf32>, vector<16x128xf32>, vector<128x128xf32> -> vector<128x128xf32>
    %c0_2 = arith.constant 0 : index
    %c0_3 = arith.constant 0 : index
    %6 = vector.load %arg3[%c0_2, %c0_3] : memref<1x128xf32, #tpu.memory_space<vmem>>, vector<1x128xf32>
    %7 = vector.broadcast %6 : vector<1x128xf32> to vector<128x128xf32>
    %8 = arith.addf %5, %7 : vector<128x128xf32>
    %9 = math.tanh %8 : vector<128x128xf32>
    %c0_4 = arith.constant 0 : index
    %c0_5 = arith.constant 0 : index
    %10 = vector.load %arg4[%c0_4, %c0_5] : memref<128x128xf32, #tpu.memory_space<vmem>>, vector<128x128xf32>
    %cst_6 = arith.constant dense<0.000000e+00> : vector<128x128xf32>
    %11 = tpu.matmul %9, %10, %cst_6 {dimension_numbers = #tpu.dot_dimension_numbers<[1], [0], [0], [1], [0, 0, 1, 1], [], []>} : vector<128x128xf32>, vector<128x128xf32>, vector<128x128xf32> -> vector<128x128xf32>
    %c0_7 = arith.constant 0 : index
    %c0_8 = arith.constant 0 : index
    %12 = vector.load %arg5[%c0_7, %c0_8] : memref<1x128xf32, #tpu.memory_space<vmem>>, vector<1x128xf32>
    %13 = vector.broadcast %12 : vector<1x128xf32> to vector<128x128xf32>
    %14 = arith.addf %11, %13 : vector<128x128xf32>
    %15 = math.tanh %14 : vector<128x128xf32>
    %c0_9 = arith.constant 0 : index
    %c0_10 = arith.constant 0 : index
    %16 = vector.load %arg6[%c0_9, %c0_10] : memref<128x128xf32, #tpu.memory_space<vmem>>, vector<128x128xf32>
    %cst_11 = arith.constant dense<0.000000e+00> : vector<128x128xf32>
    %17 = tpu.matmul %15, %16, %cst_11 {dimension_numbers = #tpu.dot_dimension_numbers<[1], [0], [0], [1], [0, 0, 1, 1], [], []>} : vector<128x128xf32>, vector<128x128xf32>, vector<128x128xf32> -> vector<128x128xf32>
    %c0_12 = arith.constant 0 : index
    %c0_13 = arith.constant 0 : index
    %18 = vector.load %arg7[%c0_12, %c0_13] : memref<1x128xf32, #tpu.memory_space<vmem>>, vector<1x128xf32>
    %19 = vector.broadcast %18 : vector<1x128xf32> to vector<128x128xf32>
    %20 = arith.addf %17, %19 : vector<128x128xf32>
    %21 = arith.index_cast %1 : i32 to index
    %c0_14 = arith.constant 0 : index
    %22 = vector.load %arg8[%21, %c0_14] : memref<256x128xf32, #tpu.memory_space<vmem>>, vector<128x128xf32>
    tpu.vector_store %arg8[%21, %c0_14], %20 {strides = array<i32>} : memref<256x128xf32, #tpu.memory_space<vmem>>, vector<128x128xf32>,
    %c1_i32 = arith.constant 1 : i32
    %c128_i32_15 = arith.constant 128 : i32
    %23 = arith.muli %c1_i32, %c128_i32_15 : i32
    %24 = tpu.assume_multiple %23, 128 : i32
    %25 = arith.index_cast %24 : i32 to index
    %c0_16 = arith.constant 0 : index
    %26 = vector.load %arg1[%25, %c0_16] : memref<256x16xf32, #tpu.memory_space<vmem>>, vector<128x16xf32>
    %c0_17 = arith.constant 0 : index
    %c0_18 = arith.constant 0 : index
    %27 = vector.load %arg2[%c0_17, %c0_18] : memref<16x128xf32, #tpu.memory_space<vmem>>, vector<16x128xf32>
    %cst_19 = arith.constant dense<0.000000e+00> : vector<128x128xf32>
    %28 = tpu.matmul %26, %27, %cst_19 {dimension_numbers = #tpu.dot_dimension_numbers<[1], [0], [0], [1], [0, 0, 1, 1], [], []>} : vector<128x16xf32>, vector<16x128xf32>, vector<128x128xf32> -> vector<128x128xf32>
    %c0_20 = arith.constant 0 : index
    %c0_21 = arith.constant 0 : index
    %29 = vector.load %arg3[%c0_20, %c0_21] : memref<1x128xf32, #tpu.memory_space<vmem>>, vector<1x128xf32>
    %30 = vector.broadcast %29 : vector<1x128xf32> to vector<128x128xf32>
    %31 = arith.addf %28, %30 : vector<128x128xf32>
    %32 = math.tanh %31 : vector<128x128xf32>
    %c0_22 = arith.constant 0 : index
    %c0_23 = arith.constant 0 : index
    %33 = vector.load %arg4[%c0_22, %c0_23] : memref<128x128xf32, #tpu.memory_space<vmem>>, vector<128x128xf32>
    %cst_24 = arith.constant dense<0.000000e+00> : vector<128x128xf32>
    %34 = tpu.matmul %32, %33, %cst_24 {dimension_numbers = #tpu.dot_dimension_numbers<[1], [0], [0], [1], [0, 0, 1, 1], [], []>} : vector<128x128xf32>, vector<128x128xf32>, vector<128x128xf32> -> vector<128x128xf32>
    %c0_25 = arith.constant 0 : index
    %c0_26 = arith.constant 0 : index
    %35 = vector.load %arg5[%c0_25, %c0_26] : memref<1x128xf32, #tpu.memory_space<vmem>>, vector<1x128xf32>
    %36 = vector.broadcast %35 : vector<1x128xf32> to vector<128x128xf32>
    %37 = arith.addf %34, %36 : vector<128x128xf32>
    %38 = math.tanh %37 : vector<128x128xf32>
    %c0_27 = arith.constant 0 : index
    %c0_28 = arith.constant 0 : index
    %39 = vector.load %arg6[%c0_27, %c0_28] : memref<128x128xf32, #tpu.memory_space<vmem>>, vector<128x128xf32>
    %cst_29 = arith.constant dense<0.000000e+00> : vector<128x128xf32>
    %40 = tpu.matmul %38, %39, %cst_29 {dimension_numbers = #tpu.dot_dimension_numbers<[1], [0], [0], [1], [0, 0, 1, 1], [], []>} : vector<128x128xf32>, vector<128x128xf32>, vector<128x128xf32> -> vector<128x128xf32>
    %c0_30 = arith.constant 0 : index
    %c0_31 = arith.constant 0 : index
    %41 = vector.load %arg7[%c0_30, %c0_31] : memref<1x128xf32, #tpu.memory_space<vmem>>, vector<1x128xf32>
    %42 = vector.broadcast %41 : vector<1x128xf32> to vector<128x128xf32>
    %43 = arith.addf %40, %42 : vector<128x128xf32>
    %44 = arith.index_cast %24 : i32 to index
    %c0_32 = arith.constant 0 : index
    %45 = vector.load %arg8[%44, %c0_32] : memref<256x128xf32, #tpu.memory_space<vmem>>, vector<128x128xf32>
    tpu.vector_store %arg8[%44, %c0_32], %43 {strides = array<i32>} : memref<256x128xf32, #tpu.memory_space<vmem>>, vector<128x128xf32>,
    %c2_i32 = arith.constant 2 : i32
    return
  }
  func.func @transform_0(%arg0: i32) -> (i32, i32) {
    %c0_i32 = arith.constant 0 : i32
    %c0_i32_0 = arith.constant 0 : i32
    return %arg0, %c0_i32 : i32, i32
  }
  func.func @transform_1(%arg0: i32) -> (i32, i32) {
    %c0_i32 = arith.constant 0 : i32
    %c0_i32_0 = arith.constant 0 : i32
    %c0_i32_1 = arith.constant 0 : i32
    return %c0_i32, %c0_i32_0 : i32, i32
  }
  func.func @transform_2(%arg0: i32) -> (i32, i32) {
    %c0_i32 = arith.constant 0 : i32
    %c0_i32_0 = arith.constant 0 : i32
    %c0_i32_1 = arith.constant 0 : i32
    return %c0_i32, %c0_i32_0 : i32, i32
  }
  func.func @transform_3(%arg0: i32) -> (i32, i32) {
    %c0_i32 = arith.constant 0 : i32
    %c0_i32_0 = arith.constant 0 : i32
    %c0_i32_1 = arith.constant 0 : i32
    return %c0_i32, %c0_i32_0 : i32, i32
  }
  func.func @transform_4(%arg0: i32) -> (i32, i32) {
    %c0_i32 = arith.constant 0 : i32
    %c0_i32_0 = arith.constant 0 : i32
    %c0_i32_1 = arith.constant 0 : i32
    return %c0_i32, %c0_i32_0 : i32, i32
  }
  func.func @transform_5(%arg0: i32) -> (i32, i32) {
    %c0_i32 = arith.constant 0 : i32
    %c0_i32_0 = arith.constant 0 : i32
    %c0_i32_1 = arith.constant 0 : i32
    return %c0_i32, %c0_i32_0 : i32, i32
  }
  func.func @transform_6(%arg0: i32) -> (i32, i32) {
    %c0_i32 = arith.constant 0 : i32
    %c0_i32_0 = arith.constant 0 : i32
    %c0_i32_1 = arith.constant 0 : i32
    return %c0_i32, %c0_i32_0 : i32, i32
  }
  func.func @transform_7(%arg0: i32) -> (i32, i32) {
    %c0_i32 = arith.constant 0 : i32
    %c0_i32_0 = arith.constant 0 : i32
    return %arg0, %c0_i32 : i32, i32
  }
}

</mosaic_0001>

<bundles_post_ra>
// kernel: tpu_custom_call.1
= control target key start
LH: loop header
LB: loop body
LE: loop exit
PB: predicated region body
PF: predicated region fallthrough
CT: control target
= control target key end

     0   :  { %12 = vsyncpa [#allocation3], 0  ;;  %s3051_s0 = inlined_call_operand.vmem [shape: f32[512,16], index: 0, kind: input, shape index: {}]   ;;  %s3052_s1 = inlined_call_operand.vmem [shape: f32[16,128], index: 1, kind: input, shape index: {}]   ;;  %s3053_s2 = inlined_call_operand.vmem [shape: f32[1,128], index: 2, kind: input, shape index: {}]   ;;  %s3054_s3 = inlined_call_operand.vmem [shape: f32[128,128], index: 3, kind: input, shape index: {}]   ;;  %s3055_s4 = inlined_call_operand.vmem [shape: f32[1,128], index: 4, kind: input, shape index: {}]   ;;  %s3056_s5 = inlined_call_operand.vmem [shape: f32[128,128], index: 5, kind: input, shape index: {}]   ;;  %s3057_s6 = inlined_call_operand.vmem [shape: f32[1,128], index: 6, kind: input, shape index: {}]   ;;  %s3058_s7 = inlined_call_operand.hbm [shape: f32[512,128], index: 7, kind: output, shape index: {}]  }
   0x1   :  { %14 = vsyncpa [#allocation3 + $0x1], 0  ;;  %s2396_s24 = smov 0   ;;  %s2398_s25 = smov 0  }
   0x2   :  { %s2400_s26 = smov 0   ;;  %s2402_s27 = smov 0  }
   0x3 LB: > { %s2417_s28 = sadd.s32 4294967295, %s2351_s27   ;;  %s1563_s29 = sadd.s32 4294967294, %s2351_s27   ;;  %s2351_s27 = sphi %s2402_s27, %s3064_s27   ;;  %s2347_s26 = sphi %s2400_s26, %s3063_s26   ;;  %s2343_s25 = sphi %s2398_s25, %s3062_s25   ;;  %s2339_s24 = sphi %s2396_s24, %s3061_s24  }
   0x4   : > { %s2421_s30 = sadd.s32 1, %s2351_s27   ;;  %s179_s8 = sadd.s32 1, %s2347_s26 }
   0x5   : > { %s176_s9 = ssub.s32 %s2351_s27, %s2421_s30  ;;  %p189_p0 = scmp.ne.s32.totalorder %s2347_s26, %s2343_s25 }
   0x6   : > { %p177_p1 = scmp.eq.s32.totalorder %s176_s9, 0  ;;  %p190_p2 = scmp.eq.s32.totalorder %s2417_s28, 1 }
   0x7   : > { %p195_p3 = scmp.ne.s32.totalorder %s2343_s25, %s2339_s24  ;;  %p196_p4 = scmp.eq.s32.totalorder %s1563_s29, 1 }
   0x8   : > { %s2432_s10 = scalar_select %p177_p1, %s2347_s26, %s179_s8  }
   0x9   : > { %p2434_p5 = por %p190_p2, %p189_p0  ;;  %p2438_p6 = por %p196_p4, %p195_p3 }
   0xa   : > { %p1566_p7 = scmp.ge.s32.totalorder %s2351_s27, 1  ;;  %p241_p8 = scmp.lt.s32.totalorder %s2351_s27, 3 }
   0xc   : > { %p242_p9 = pnand %p1566_p7, %p241_p8 }
   0xd   : > { %s1568_s17 = sshll.u32 (!%p242_p9), %s2417_s28, 5  ;;  %s270_s22 = sand.u32 (!%p242_p9), 1, %s2343_s25  }
   0xe   : > { %245 = sbr.rel (%p242_p9) target bundleno = 932 (0x3a4), region = 48  ;;  %p274_p10 = scmp.lt.s32.totalorder (!%p242_p9), %s1568_s17, 63 }
   0xf   : > { %s1567_s23 = sshll.u32 (!%p242_p9), %s270_s22, 8  ;;  %s1645_s13 = sshll.u32 (!%p242_p9), %s2417_s28, 12 }
  0x10   : > { %s3011_s28 = scalar_lea.sflag (!%p242_p9), [#allocation3], %s270_s22  ;;  %s2353_s20 = smov (!%p242_p9), [#allocation2]  }
  0x13   : > { %v2447_v0 = vld [vmem:[%s3052_s1 + $0x8] sm:$0xff]  ;;  %v2452_v1 = vld [vmem:[%s3052_s1] sm:$0xff]  ;;  %v2458_v2 = vld [vmem:[%s3054_s3 + $0x78] sm:$0xff]  ;;  %s3066_s17 = smov (!%p274_p10, %s1568_s17), 63  ;;  %vm305_vm0 = vcmask 130048  }
  0x14   : > { %1810 = vmatprep.subr.mxu0 %v2447_v0  ;;  %1838 = vmatprep.subr.mxu1 %v2458_v2  ;;  %v2465_v3 = vld [vmem:[%s3054_s3 + $0x70] sm:$0xff]  ;;  %v2472_v4 = vld [vmem:[%s3054_s3 + $0x68] sm:$0xff]  ;;  %v2481_v5 = vld [vmem:[%s3054_s3 + $0x60] sm:$0xff]  ;;  %s1569_s9 = sshll.u32 %s3066_s17, 3  ;;  %s3002_s17 = scalar_lea.hbm %s3058_s7, %s1645_s13 }
  0x15   : > { %1811 = vmatpush3.msra.mxu0 %v2447_v0  ;;  %1839 = vmatpush3.msra.mxu1 %v2458_v2  ;;  %s2487_s15 = scalar_lea.vmem %s3051_s0, %s1569_s9  ;;  %v2493_v6 = vld [vmem:[%s3054_s3 + $0x58] sm:$0xff]  ;;  %v2504_v10 = vld [vmem:[%s3054_s3 + $0x50] sm:$0xff]  ;;  %v2514_v12 = vld [vmem:[%s3054_s3 + $0x48] sm:$0xff]  ;;  %s2919_s9 = scalar_lea.vmem [#allocation2], %s1567_s23 }
  0x16   : > { %1812 = vmatprep.subr.mxu0 %v2452_v1  ;;  %1840 = vmatprep.subr.mxu1 %v2465_v3  ;;  %v280_v7 = vld [vmem:[%s2487_s15] sm:$0xff]  ;;  %v281_v8 = vld [vmem:[%s2487_s15 + $0x8] sm:$0xff]  ;;  %v282_v9 = vld [vmem:[%s2487_s15 + $0x10] sm:$0xff]  ;;  %s1501_s14 = sshll.u32 %s2919_s9, 4  ;;  %s3004_s14 = int_to_ptr.vmem [resolvable:$true] %s1501_s14 }
  0x17   : > { %1813 = vmatpush3.msra.mxu0 %v2452_v1  ;;  %1841 = vmatpush3.msra.mxu1 %v2465_v3  ;;  %v283_v11 = vld [vmem:[%s2487_s15 + $0x18] sm:$0xff]  ;;  %v284_v13 = vld [vmem:[%s2487_s15 + $0x20] sm:$0xff]  ;;  %v285_v14 = vld [vmem:[%s2487_s15 + $0x28] sm:$0xff]  ;;  %s2291_s19 = scalar_lea.vmem %s3004_s14, 4096 }
  0x18   : > { %1842 = vmatprep.subr.mxu1 %v2472_v4  ;;  %1814 = vmatprep.mubr.msk.f32.mxu0 %vm305_vm0, %v280_v7  ;;  %v286_v15 = vld [vmem:[%s2487_s15 + $0x30] sm:$0xff]  ;;  %v287_v16 = vld [vmem:[%s2487_s15 + $0x38] sm:$0xff]  ;;  %v288_v17 = vld [vmem:[%s2487_s15 + $0x40] sm:$0xff]  ;;  %p2292_p11 = scmp.ne.s32.totalorder %s3004_s14, %s2291_s19 }
  0x19   : > { %1843 = vmatpush3.msra.mxu1 %v2472_v4  ;;  %1815 = vmatmul.mubr.msk.f32.vlgmr.msra.gmra.mxu0 %vm305_vm0, %v281_v8  ;;  %v289_v18 = vld [vmem:[%s2487_s15 + $0x48] sm:$0xff]  ;;  %v290_v19 = vld [vmem:[%s2487_s15 + $0x50] sm:$0xff]  ;;  %v291_v20 = vld [vmem:[%s2487_s15 + $0x58] sm:$0xff] }
  0x1a   : > { %1844 = vmatprep.subr.mxu1 %v2481_v5  ;;  %1817 = vmatprep.mubr.msk.f32.mxu0 %vm305_vm0, %v282_v9  ;;  %v292_v21 = vld [vmem:[%s2487_s15 + $0x60] sm:$0xff]  ;;  %v293_v22 = vld [vmem:[%s2487_s15 + $0x68] sm:$0xff]  ;;  %v294_v23 = vld [vmem:[%s2487_s15 + $0x70] sm:$0xff]  ;;  %p2293_p12 = pnand %p2292_p11, %p2434_p5 }
  0x1b   : > { %1845 = vmatpush3.msra.mxu1 %v2481_v5  ;;  %v295_v24 = vld [vmem:[%s2487_s15 + $0x78] sm:$0xff]  ;;  %v2548_v25 = vld [vmem:[%s3054_s3 + $0x40] sm:$0xff]  ;;  %v2562_v27 = vld [vmem:[%s3054_s3 + $0x30] sm:$0xff] }
  0x1c   : > { %1846 = vmatprep.subr.mxu1 %v2493_v6  ;;  %v2555_v26 = vld [vmem:[%s3054_s3 + $0x38] sm:$0xff]  ;;  %v2569_v28 = vld [vmem:[%s3054_s3 + $0x28] sm:$0xff]  ;;  %v2576_v29 = vld [vmem:[%s3054_s3 + $0x20] sm:$0xff]  ;;  %p2294_p13 = pneg %p2293_p12 }
  0x1d   : > { %1847 = vmatpush3.msra.mxu1 %v2493_v6  ;;  %1818 = vmatmul.mubr.msk.f32.gmra.mxu0 %vm305_vm0, %v283_v11  ;;  %v2583_v30 = vld [vmem:[%s3054_s3 + $0x18] sm:$0xff]  ;;  %v2590_v31 = vld [vmem:[%s3054_s3 + $0x10] sm:$0xff]  ;;  %v2597_v32 = vld [vmem:[%s3054_s3 + $0x8] sm:$0xff] }
  0x1e   : > { %1848 = vmatprep.subr.mxu1 %v2504_v10  ;;  %1820 = vmatprep.mubr.msk.f32.mxu0 %vm305_vm0, %v284_v13  ;;  %v2604_v33 = vld [vmem:[%s3054_s3] sm:$0xff]  ;;  %v2612_v34 = vld [vmem:[%s3056_s5 + $0x78] sm:$0xff]  ;;  %v2617_v35 = vld [vmem:[%s3056_s5 + $0x70] sm:$0xff] }
  0x1f   : > { %1849 = vmatpush3.msra.mxu1 %v2504_v10  ;;  %1894 = vmatprep.subr.mxu0 %v2612_v34  ;;  %v2624_v36 = vld [vmem:[%s3056_s5 + $0x68] sm:$0xff]  ;;  %v2631_v37 = vld [vmem:[%s3056_s5 + $0x60] sm:$0xff]  ;;  %v2638_v38 = vld [vmem:[%s3056_s5 + $0x58] sm:$0xff] }
  0x20   : > { %1850 = vmatprep.subr.mxu1 %v2514_v12  ;;  %1895 = vmatpush3.msra.mxu0 %v2612_v34  ;;  %v2645_v39 = vld [vmem:[%s3056_s5 + $0x50] sm:$0xff]  ;;  %v2652_v40 = vld [vmem:[%s3056_s5 + $0x48] sm:$0xff]  ;;  %v2661_v41 = vld [vmem:[%s3053_s2] ss:$0 sm:$0xff] }
  0x21   : > { %1851 = vmatpush3.msra.mxu1 %v2514_v12  ;;  %1821 = vmatmul.mubr.msk.f32.gmra.mxu0 %vm305_vm0, %v285_v14 }
  0x22   : > { %1823 = vmatprep.mubr.msk.f32.mxu0 %vm305_vm0, %v286_v15  ;;  %1852 = vmatprep.subr.mxu1 %v2548_v25 }
  0x23   : > { %1853 = vmatpush3.msra.mxu1 %v2548_v25  ;;  %1896 = vmatprep.subr.mxu0 %v2617_v35 }
  0x24   : > { %1854 = vmatprep.subr.mxu1 %v2555_v26  ;;  %1897 = vmatpush3.msra.mxu0 %v2617_v35 }
  0x25   : > { %1824 = vmatmul.mubr.msk.f32.gmra.mxu0 %vm305_vm0, %v287_v16  ;;  %1855 = vmatpush3.msra.mxu1 %v2555_v26 }
  0x26   : > { %1826 = vmatprep.mubr.msk.f32.mxu0 %vm305_vm0, %v288_v17  ;;  %1856 = vmatprep.subr.mxu1 %v2562_v27 }
  0x27   : > { %1857 = vmatpush3.msra.mxu1 %v2562_v27  ;;  %1898 = vmatprep.subr.mxu0 %v2624_v36 }
  0x28   : > { %1858 = vmatprep.subr.mxu1 %v2569_v28  ;;  %1899 = vmatpush3.msra.mxu0 %v2624_v36 }
  0x29   : > { %1827 = vmatmul.mubr.msk.f32.gmra.mxu0 %vm305_vm0, %v289_v18  ;;  %1859 = vmatpush3.msra.mxu1 %v2569_v28 }
  0x2a   : > { %1829 = vmatprep.mubr.msk.f32.mxu0 %vm305_vm0, %v290_v19  ;;  %1860 = vmatprep.subr.mxu1 %v2576_v29 }
  0x2b   : > { %1861 = vmatpush3.msra.mxu1 %v2576_v29  ;;  %1900 = vmatprep.subr.mxu0 %v2631_v37 }
  0x2c   : > { %1862 = vmatprep.subr.mxu1 %v2583_v30  ;;  %1901 = vmatpush3.msra.mxu0 %v2631_v37 }
  0x2d   : > { %1830 = vmatmul.mubr.msk.f32.gmra.mxu0 %vm305_vm0, %v291_v20  ;;  %1863 = vmatpush3.msra.mxu1 %v2583_v30 }
  0x2e   : > { %1832 = vmatprep.mubr.msk.f32.mxu0 %vm305_vm0, %v292_v21  ;;  %1864 = vmatprep.subr.mxu1 %v2590_v31 }
  0x2f   : > { %1865 = vmatpush3.msra.mxu1 %v2590_v31  ;;  %1902 = vmatprep.subr.mxu0 %v2638_v38 }
  0x30   : > { %1866 = vmatprep.subr.mxu1 %v2597_v32  ;;  %1903 = vmatpush3.msra.mxu0 %v2638_v38 }
  0x31   : > { %1833 = vmatmul.mubr.msk.f32.gmra.mxu0 %vm305_vm0, %v293_v22  ;;  %1867 = vmatpush3.msra.mxu1 %v2597_v32 }
  0x32   : > { %1835 = vmatprep.mubr.msk.f32.mxu0 %vm305_vm0, %v294_v23  ;;  %1868 = vmatprep.subr.mxu1 %v2604_v33 }
  0x33   : > { %1869 = vmatpush3.msra.mxu1 %v2604_v33  ;;  %1904 = vmatprep.subr.mxu0 %v2645_v39 }
  0x34   : > { %1950 = vmatprep.subr.mxu1 %v2447_v0  ;;  %1905 = vmatpush3.msra.mxu0 %v2645_v39 }
  0x35   : > { %1836 = vmatmul.mubr.msk.f32.gmra.mxu0 %vm305_vm0, %v295_v24  ;;  %1906 = vmatprep.subr.mxu0 %v2652_v40 }
  0x36   : > { %1907 = vmatpush3.msra.mxu0 %v2652_v40 }
  0xd9   : > { %v1816_v42 = vpop.f32.mrf.mxu0 }
  0xda   : > { %v426_v43 = vadd.f32 %v1816_v42, %v2661_v41 }
  0xdb   : > { %v420_v44 = vpop.f32.mrf.mxu0 }
  0xdc   : > { %v421_v45 = vadd.f32 %v2661_v41, %v420_v44 }
  0xdd   : > { %v1819_v46 = vpop.f32.mrf.mxu0 }
  0xde   : > { %2163 = vtanh.f32 %v421_v45  ;;  %v436_v47 = vadd.f32 %v1819_v46, %v2661_v41 }
  0xdf   : > { %2165 = vtanh.f32 %v426_v43  ;;  %v430_v48 = vpop.f32.mrf.mxu0 }
  0xe0   : > { %v431_v49 = vadd.f32 %v2661_v41, %v430_v48 }
  0xe1   : > { %v1822_v50 = vpop.f32.mrf.mxu0 }
  0xe2   : > { %2167 = vtanh.f32 %v431_v49  ;;  %v446_v51 = vadd.f32 %v1822_v50, %v2661_v41  ;;  %v1589_v49 = vld [vmem:[%s2487_s15 + $0x80] sm:$0xff] }
  0xe3   : > { %2169 = vtanh.f32 %v436_v47  ;;  %v440_v52 = vpop.f32.mrf.mxu0 }
  0xe4   : > { %v441_v53 = vadd.f32 %v2661_v41, %v440_v52  ;;  %v1591_v52 = vld [vmem:[%s2487_s15 + $0x90] sm:$0xff] }
  0xe5   : > { %v1825_v54 = vpop.f32.mrf.mxu0 }
  0xe6   : > { %2171 = vtanh.f32 %v441_v53  ;;  %v456_v55 = vadd.f32 %v1825_v54, %v2661_v41  ;;  %v1592_v53 = vld [vmem:[%s2487_s15 + $0x98] sm:$0xff]  ;;  %v1593_v54 = vld [vmem:[%s2487_s15 + $0xa0] sm:$0xff] }
  0xe7   : > { %2173 = vtanh.f32 %v446_v51  ;;  %v450_v56 = vpop.f32.mrf.mxu0  ;;  %v1590_v51 = vld [vmem:[%s2487_s15 + $0x88] sm:$0xff] }
  0xe8   : > { %v451_v57 = vadd.f32 %v2661_v41, %v450_v56  ;;  %v1595_v56 = vld [vmem:[%s2487_s15 + $0xb0] sm:$0xff] }
  0xe9   : > { %v1828_v58 = vpop.f32.mrf.mxu0 }
  0xea   : > { %2175 = vtanh.f32 %v451_v57  ;;  %v466_v60 = vadd.f32 %v1828_v58, %v2661_v41  ;;  %v1596_v57 = vld [vmem:[%s2487_s15 + $0xb8] sm:$0xff]  ;;  %v1597_v58 = vld [vmem:[%s2487_s15 + $0xc0] sm:$0xff] }
  0xeb   : > { %v2164_v59 = vpop.eup %2163  ;;  %2177 = vtanh.f32 %v456_v55  ;;  %v460_v61 = vpop.f32.mrf.mxu0  ;;  %v1594_v55 = vld [vmem:[%s2487_s15 + $0xa8] sm:$0xff] }
  0xec   : > { %v2166_v62 = vpop.eup %2165  ;;  %v461_v63 = vadd.f32 %v2661_v41, %v460_v61  ;;  %1870 = vmatprep.mubr.f32.mxu1 %v2164_v59  ;;  %v1598_v59 = vld [vmem:[%s2487_s15 + $0xc8] sm:$0xff]  ;;  %v1600_v61 = vld [vmem:[%s2487_s15 + $0xd8] sm:$0xff] }
  0xed   : > { %v1831_v7 = vpop.f32.mrf.mxu0  ;;  %1871 = vmatmul.mubr.f32.vlgmr.msra.gmra.mxu1 %v2166_v62  ;;  %v1601_v62 = vld [vmem:[%s2487_s15 + $0xe0] sm:$0xff] }
  0xee   : > { %2179 = vtanh.f32 %v461_v63  ;;  %1951 = vmatpush3.msra.mxu1 %v2447_v0  ;;  %v476_v9 = vadd.f32 %v1831_v7, %v2661_v41  ;;  %v1602_v63 = vld [vmem:[%s2487_s15 + $0xe8] sm:$0xff]  ;;  %v1603_v7 = vld [vmem:[%s2487_s15 + $0xf0] sm:$0xff] }
  0xef   : > { %v2168_v8 = vpop.eup %2167  ;;  %2181 = vtanh.f32 %v466_v60  ;;  %v470_v11 = vpop.f32.mrf.mxu0  ;;  %1952 = vmatprep.subr.mxu1 %v2452_v1  ;;  %v1599_v60 = vld [vmem:[%s2487_s15 + $0xd0] sm:$0xff] }
  0xf0   : > { %v2170_v13 = vpop.eup %2169  ;;  %v471_v14 = vadd.f32 %v2661_v41, %v470_v11  ;;  %1873 = vmatprep.mubr.f32.mxu1 %v2168_v8  ;;  %1953 = vmatpush3.msra.mxu1 %v2452_v1  ;;  %v1604_v8 = vld [vmem:[%s2487_s15 + $0xf8] sm:$0xff]  ;;  %s2295_s15 = sshll.u32 %s2353_s20, 4  ;;  %s2296_s15 = int_to_ptr.vmem [resolvable:$false] %s2295_s15 }
  0xf1   : > { %v1834_v15 = vpop.f32.mrf.mxu0  ;;  %1874 = vmatmul.mubr.f32.gmra.mxu1 %v2170_v13  ;;  %2090 = vmatprep.subr.mxu1 %v2612_v34  ;;  %v2739_v11 = vld [vmem:[%s3056_s5 + $0x38] sm:$0xff]  ;;  %v2748_v13 = vld [vmem:[%s3056_s5 + $0x30] sm:$0xff]  ;;  %s2297_s21 = scalar_lea.vmem %s2296_s15, 8192  ;;  %p2298_p0 = scmp.lt.s32.totalorder %s3004_s14, %s2296_s15 }
  0xf2   : > { %2183 = vtanh.f32 %v471_v14  ;;  %v486_v0 = vadd.f32 %v1834_v15, %v2661_v41  ;;  %v2757_v14 = vld [vmem:[%s3056_s5 + $0x28] sm:$0xff]  ;;  %v2766_v15 = vld [vmem:[%s3056_s5 + $0x20] sm:$0xff]  ;;  %p2299_p1 = scmp.lt.s32.totalorder %s2297_s21, %s2291_s19 }
  0xf3   : > { %v2172_v16 = vpop.eup %2171  ;;  %2185 = vtanh.f32 %v476_v9  ;;  %v480_v17 = vpop.f32.mrf.mxu0  ;;  %v2731_v9 = vld [vmem:[%s3056_s5 + $0x40] sm:$0xff] }
  0xf4   : > { %v2174_v18 = vpop.eup %2173  ;;  %v481_v19 = vadd.f32 %v2661_v41, %v480_v17  ;;  %1876 = vmatprep.mubr.f32.mxu1 %v2172_v16  ;;  %1908 = vmatprep.subr.mxu0 %v2731_v9  ;;  %v2775_v16 = vld [vmem:[%s3056_s5 + $0x18] sm:$0xff]  ;;  %v2793_v17 = vld [vmem:[%s3056_s5 + $0x8] sm:$0xff]  ;;  %p2300_p2 = por %p2299_p1, %p2298_p0 }
  0xf5   : > { %v1837_v20 = vpop.f32.mrf.mxu0  ;;  %1877 = vmatmul.mubr.f32.gmra.mxu1 %v2174_v18  ;;  %1909 = vmatpush3.msra.mxu0 %v2731_v9  ;;  %v2802_v18 = vld [vmem:[%s3056_s5] sm:$0xff] }
  0xf6   : > { %2187 = vtanh.f32 %v481_v19  ;;  %v496_v1 = vadd.f32 %v1837_v20, %v2661_v41  ;;  %1910 = vmatprep.subr.mxu0 %v2739_v11  ;;  %v2813_v19 = vld [vmem:[%s3055_s4] ss:$0 sm:$0xff]  ;;  %p2301_p3 = pnand %p2300_p2, %p2294_p13 }
  0xf7   : > { %v2176_v21 = vpop.eup %2175  ;;  %2189 = vtanh.f32 %v486_v0  ;;  %v490_v22 = vpop.f32.mrf.mxu0  ;;  %1911 = vmatpush3.msra.mxu0 %v2739_v11  ;;  %v2784_v0 = vld [vmem:[%s3056_s5 + $0x10] sm:$0xff] }
  0xf8   : > { %v2178_v23 = vpop.eup %2177  ;;  %v491_v24 = vadd.f32 %v2661_v41, %v490_v22  ;;  %1879 = vmatprep.mubr.f32.mxu1 %v2176_v21  ;;  %1912 = vmatprep.subr.mxu0 %v2748_v13 }
  0xf9   : > { %1880 = vmatmul.mubr.f32.gmra.mxu1 %v2178_v23  ;;  %1913 = vmatpush3.msra.mxu0 %v2748_v13 }
  0xfa   : > { %2191 = vtanh.f32 %v491_v24  ;;  %1914 = vmatprep.subr.mxu0 %v2757_v14 }
  0xfb   : > { %v2180_v42 = vpop.eup %2179  ;;  %2193 = vtanh.f32 %v496_v1  ;;  %1915 = vmatpush3.msra.mxu0 %v2757_v14 }
  0xfc   : > { %v2182_v43 = vpop.eup %2181  ;;  %1882 = vmatprep.mubr.f32.mxu1 %v2180_v42  ;;  %1916 = vmatprep.subr.mxu0 %v2766_v15 }
  0xfd   : > { %1883 = vmatmul.mubr.f32.gmra.mxu1 %v2182_v43  ;;  %1917 = vmatpush3.msra.mxu0 %v2766_v15 }
  0xfe   : > { %1918 = vmatprep.subr.mxu0 %v2775_v16 }
  0xff   : > { %v2184_v44 = vpop.eup %2183  ;;  %1919 = vmatpush3.msra.mxu0 %v2775_v16 }
 0x100   : > { %v2186_v45 = vpop.eup %2185  ;;  %1885 = vmatprep.mubr.f32.mxu1 %v2184_v44  ;;  %1920 = vmatprep.subr.mxu0 %v2784_v0 }
 0x101   : > { %1886 = vmatmul.mubr.f32.gmra.mxu1 %v2186_v45  ;;  %1921 = vmatpush3.msra.mxu0 %v2784_v0 }
 0x102   : > { %1922 = vmatprep.subr.mxu0 %v2793_v17 }
 0x103   : > { %v2188_v46 = vpop.eup %2187  ;;  %1923 = vmatpush3.msra.mxu0 %v2793_v17 }
 0x104   : > { %v2190_v47 = vpop.eup %2189  ;;  %1888 = vmatprep.mubr.f32.mxu1 %v2188_v46  ;;  %1924 = vmatprep.subr.mxu0 %v2802_v18 }
 0x105   : > { %1889 = vmatmul.mubr.f32.gmra.mxu1 %v2190_v47  ;;  %1925 = vmatpush3.msra.mxu0 %v2802_v18 }
 0x106   : > { %1978 = vmatprep.subr.mxu0 %v2458_v2 }
 0x107   : > { %v2192_v48 = vpop.eup %2191 }
 0x108   : > { %v2194_v50 = vpop.eup %2193  ;;  %1891 = vmatprep.mubr.f32.mxu1 %v2192_v48 }
 0x109   : > { %1892 = vmatmul.mubr.f32.gmra.mxu1 %v2194_v50 }
 0x10a   : > { %1954 = vmatprep.mubr.msk.f32.mxu1 %vm305_vm0, %v1589_v49 }
 0x10d   : > { %1955 = vmatmul.mubr.msk.f32.vlgmr.msra.gmra.mxu1 %vm305_vm0, %v1590_v51 }
 0x10e   : > { %1957 = vmatprep.mubr.msk.f32.mxu1 %vm305_vm0, %v1591_v52  ;;  %2106 = vmatpush3.msra.mxu1 %v2612_v34 }
 0x10f   : > { %2091 = vmatprep.subr.mxu1 %v2617_v35 }
 0x110   : > { %2107 = vmatpush3.msra.mxu1 %v2617_v35 }
 0x111   : > { %1958 = vmatmul.mubr.msk.f32.gmra.mxu1 %vm305_vm0, %v1592_v53  ;;  %2092 = vmatprep.subr.mxu1 %v2624_v36 }
 0x112   : > { %1960 = vmatprep.mubr.msk.f32.mxu1 %vm305_vm0, %v1593_v54  ;;  %2108 = vmatpush3.msra.mxu1 %v2624_v36 }
 0x113   : > { %2093 = vmatprep.subr.mxu1 %v2631_v37 }
 0x114   : > { %2109 = vmatpush3.msra.mxu1 %v2631_v37 }
 0x115   : > { %1961 = vmatmul.mubr.msk.f32.gmra.mxu1 %vm305_vm0, %v1594_v55  ;;  %2094 = vmatprep.subr.mxu1 %v2638_v38 }
 0x116   : > { %1963 = vmatprep.mubr.msk.f32.mxu1 %vm305_vm0, %v1595_v56  ;;  %2110 = vmatpush3.msra.mxu1 %v2638_v38 }
 0x117   : > { %2095 = vmatprep.subr.mxu1 %v2645_v39 }
 0x118   : > { %2111 = vmatpush3.msra.mxu1 %v2645_v39 }
 0x119   : > { %1964 = vmatmul.mubr.msk.f32.gmra.mxu1 %vm305_vm0, %v1596_v57  ;;  %2096 = vmatprep.subr.mxu1 %v2652_v40 }
 0x11a   : > { %1966 = vmatprep.mubr.msk.f32.mxu1 %vm305_vm0, %v1597_v58  ;;  %2112 = vmatpush3.msra.mxu1 %v2652_v40 }
 0x11b   : > { %2097 = vmatprep.subr.mxu1 %v2731_v9 }
 0x11c   : > { %2113 = vmatpush3.msra.mxu1 %v2731_v9 }
 0x11d   : > { %1967 = vmatmul.mubr.msk.f32.gmra.mxu1 %vm305_vm0, %v1598_v59  ;;  %2098 = vmatprep.subr.mxu1 %v2739_v11 }
 0x11e   : > { %1969 = vmatprep.mubr.msk.f32.mxu1 %vm305_vm0, %v1599_v60  ;;  %2114 = vmatpush3.msra.mxu1 %v2739_v11 }
 0x11f   : > { %2099 = vmatprep.subr.mxu1 %v2748_v13 }
 0x120   : > { %2115 = vmatpush3.msra.mxu1 %v2748_v13 }
 0x121   : > { %1970 = vmatmul.mubr.msk.f32.gmra.mxu1 %vm305_vm0, %v1600_v61  ;;  %2100 = vmatprep.subr.mxu1 %v2757_v14 }
 0x122   : > { %1972 = vmatprep.mubr.msk.f32.mxu1 %vm305_vm0, %v1601_v62  ;;  %2116 = vmatpush3.msra.mxu1 %v2757_v14 }
 0x123   : > { %2101 = vmatprep.subr.mxu1 %v2766_v15 }
 0x124   : > { %2117 = vmatpush3.msra.mxu1 %v2766_v15 }
 0x125   : > { %1973 = vmatmul.mubr.msk.f32.gmra.mxu1 %vm305_vm0, %v1602_v63  ;;  %2102 = vmatprep.subr.mxu1 %v2775_v16 }
 0x126   : > { %1975 = vmatprep.mubr.msk.f32.mxu1 %vm305_vm0, %v1603_v7  ;;  %2118 = vmatpush3.msra.mxu1 %v2775_v16 }
 0x127   : > { %2103 = vmatprep.subr.mxu1 %v2784_v0 }
 0x128   : > { %2119 = vmatpush3.msra.mxu1 %v2784_v0 }
 0x129   : > { %1976 = vmatmul.mubr.msk.f32.gmra.mxu1 %vm305_vm0, %v1604_v8  ;;  %2104 = vmatprep.subr.mxu1 %v2793_v17 }
 0x12a   : > { %2120 = vmatpush3.msra.mxu1 %v2793_v17 }
 0x12b   : > { %2105 = vmatprep.subr.mxu1 %v2802_v18 }
 0x12c   : > { %2121 = vmatpush3.msra.mxu1 %v2802_v18 }
 0x1ad   : > { %v1872_v20 = vpop.f32.mrf.mxu1 }
 0x1ae   : > { %v610_v21 = vadd.f32 %v1872_v20, %v2813_v19 }
 0x1af   : > { %v604_v1 = vpop.f32.mrf.mxu1 }
 0x1b0   : > { %v605_v22 = vadd.f32 %v2813_v19, %v604_v1 }
 0x1b1   : > { %v1875_v23 = vpop.f32.mrf.mxu1 }
 0x1b2   : > { %2195 = vtanh.f32 %v605_v22  ;;  %v620_v24 = vadd.f32 %v1875_v23, %v2813_v19 }
 0x1b3   : > { %2197 = vtanh.f32 %v610_v21  ;;  %v614_v42 = vpop.f32.mrf.mxu1 }
 0x1b4   : > { %v615_v43 = vadd.f32 %v2813_v19, %v614_v42 }
 0x1b5   : > { %v1878_v44 = vpop.f32.mrf.mxu1 }
 0x1b6   : > { %2199 = vtanh.f32 %v615_v43  ;;  %v630_v45 = vadd.f32 %v1878_v44, %v2813_v19 }
 0x1b7   : > { %2201 = vtanh.f32 %v620_v24  ;;  %v624_v46 = vpop.f32.mrf.mxu1 }
 0x1b8   : > { %v625_v47 = vadd.f32 %v2813_v19, %v624_v46 }
 0x1b9   : > { %v1881_v48 = vpop.f32.mrf.mxu1 }
 0x1ba   : > { %2203 = vtanh.f32 %v625_v47  ;;  %v640_v49 = vadd.f32 %v1881_v48, %v2813_v19 }
 0x1bb   : > { %2205 = vtanh.f32 %v630_v45  ;;  %v634_v50 = vpop.f32.mrf.mxu1 }
 0x1bc   : > { %v635_v51 = vadd.f32 %v2813_v19, %v634_v50 }
 0x1bd   : > { %v1884_v52 = vpop.f32.mrf.mxu1 }
 0x1be   : > { %2207 = vtanh.f32 %v635_v51  ;;  %v650_v54 = vadd.f32 %v1884_v52, %v2813_v19 }
 0x1bf   : > { %v2196_v53 = vpop.eup %2195  ;;  %2209 = vtanh.f32 %v640_v49  ;;  %v644_v55 = vpop.f32.mrf.mxu1 }
 0x1c0   : > { %v2198_v56 = vpop.eup %2197  ;;  %v645_v57 = vadd.f32 %v2813_v19, %v644_v55  ;;  %1926 = vmatprep.mubr.f32.mxu0 %v2196_v53 }
 0x1c1   : > { %v1887_v58 = vpop.f32.mrf.mxu1  ;;  %1927 = vmatmul.mubr.f32.vlgmr.msra.gmra.mxu0 %v2198_v56 }
 0x1c2   : > { %2211 = vtanh.f32 %v645_v57  ;;  %1979 = vmatpush3.msra.mxu0 %v2458_v2  ;;  %v660_v60 = vadd.f32 %v1887_v58, %v2813_v19 }
 0x1c3   : > { %v2200_v59 = vpop.eup %2199  ;;  %2213 = vtanh.f32 %v650_v54  ;;  %1980 = vmatprep.subr.mxu0 %v2465_v3  ;;  %v654_v61 = vpop.f32.mrf.mxu1 }
 0x1c4   : > { %v2202_v62 = vpop.eup %2201  ;;  %v655_v63 = vadd.f32 %v2813_v19, %v654_v61  ;;  %1981 = vmatpush3.msra.mxu0 %v2465_v3  ;;  %1929 = vmatprep.mubr.f32.mxu0 %v2200_v59 }
 0x1c5   : > { %1982 = vmatprep.subr.mxu0 %v2472_v4  ;;  %v1890_v7 = vpop.f32.mrf.mxu1  ;;  %1930 = vmatmul.mubr.f32.gmra.mxu0 %v2202_v62 }
 0x1c6   : > { %2215 = vtanh.f32 %v655_v63  ;;  %1983 = vmatpush3.msra.mxu0 %v2472_v4  ;;  %v670_v8 = vadd.f32 %v1890_v7, %v2813_v19 }
 0x1c7   : > { %v2204_v2 = vpop.eup %2203  ;;  %2217 = vtanh.f32 %v660_v60  ;;  %1984 = vmatprep.subr.mxu0 %v2481_v5  ;;  %v664_v20 = vpop.f32.mrf.mxu1 }
 0x1c8   : > { %v2206_v21 = vpop.eup %2205  ;;  %v665_v1 = vadd.f32 %v2813_v19, %v664_v20  ;;  %1985 = vmatpush3.msra.mxu0 %v2481_v5  ;;  %1932 = vmatprep.mubr.f32.mxu0 %v2204_v2 }
 0x1c9   : > { %1986 = vmatprep.subr.mxu0 %v2493_v6  ;;  %v1893_v3 = vpop.f32.mrf.mxu1  ;;  %1933 = vmatmul.mubr.f32.gmra.mxu0 %v2206_v21 }
 0x1ca   : > { %2219 = vtanh.f32 %v665_v1  ;;  %1987 = vmatpush3.msra.mxu0 %v2493_v6  ;;  %v680_v22 = vadd.f32 %v1893_v3, %v2813_v19 }
 0x1cb   : > { %v2208_v4 = vpop.eup %2207  ;;  %2221 = vtanh.f32 %v670_v8  ;;  %1988 = vmatprep.subr.mxu0 %v2504_v10  ;;  %v674_v23 = vpop.f32.mrf.mxu1 }
 0x1cc   : > { %v2210_v24 = vpop.eup %2209  ;;  %v675_v42 = vadd.f32 %v2813_v19, %v674_v23  ;;  %1989 = vmatpush3.msra.mxu0 %v2504_v10  ;;  %1935 = vmatprep.mubr.f32.mxu0 %v2208_v4 }
 0x1cd   : > { %1990 = vmatprep.subr.mxu0 %v2514_v12  ;;  %1936 = vmatmul.mubr.f32.gmra.mxu0 %v2210_v24  ;;  %v1956_v5 = vpop.f32.mrf.mxu1 }
 0x1ce   : > { %2223 = vtanh.f32 %v675_v42  ;;  %1991 = vmatpush3.msra.mxu0 %v2514_v12  ;;  %v1029_v43 = vadd.f32 %v1956_v5, %v2661_v41 }
 0x1cf   : > { %v2212_v6 = vpop.eup %2211  ;;  %2225 = vtanh.f32 %v680_v22  ;;  %1992 = vmatprep.subr.mxu0 %v2548_v25  ;;  %v1023_v44 = vpop.f32.mrf.mxu1 }
 0x1d0   : > { %v2214_v45 = vpop.eup %2213  ;;  %v1024_v46 = vadd.f32 %v2661_v41, %v1023_v44  ;;  %1993 = vmatpush3.msra.mxu0 %v2548_v25  ;;  %1938 = vmatprep.mubr.f32.mxu0 %v2212_v6 }
 0x1d1   : > { %1994 = vmatprep.subr.mxu0 %v2555_v26  ;;  %1939 = vmatmul.mubr.f32.gmra.mxu0 %v2214_v45  ;;  %v1959_v10 = vpop.f32.mrf.mxu1 }
 0x1d2   : > { %2227 = vtanh.f32 %v1024_v46  ;;  %1995 = vmatpush3.msra.mxu0 %v2555_v26  ;;  %v1039_v47 = vadd.f32 %v1959_v10, %v2661_v41 }
 0x1d3   : > { %v2216_v12 = vpop.eup %2215  ;;  %2229 = vtanh.f32 %v1029_v43  ;;  %1996 = vmatprep.subr.mxu0 %v2562_v27  ;;  %v1033_v48 = vpop.f32.mrf.mxu1 }
 0x1d4   : > { %v2218_v49 = vpop.eup %2217  ;;  %v1034_v50 = vadd.f32 %v2661_v41, %v1033_v48  ;;  %1997 = vmatpush3.msra.mxu0 %v2562_v27  ;;  %1941 = vmatprep.mubr.f32.mxu0 %v2216_v12 }
 0x1d5   : > { %1998 = vmatprep.subr.mxu0 %v2569_v28  ;;  %1942 = vmatmul.mubr.f32.gmra.mxu0 %v2218_v49  ;;  %v1962_v25 = vpop.f32.mrf.mxu1 }
 0x1d6   : > { %2231 = vtanh.f32 %v1034_v50  ;;  %1999 = vmatpush3.msra.mxu0 %v2569_v28  ;;  %v1049_v51 = vadd.f32 %v1962_v25, %v2661_v41 }
 0x1d7   : > { %v2220_v26 = vpop.eup %2219  ;;  %2233 = vtanh.f32 %v1039_v47  ;;  %2000 = vmatprep.subr.mxu0 %v2576_v29  ;;  %v1043_v52 = vpop.f32.mrf.mxu1 }
 0x1d8   : > { %v2222_v53 = vpop.eup %2221  ;;  %v1044_v54 = vadd.f32 %v2661_v41, %v1043_v52  ;;  %2001 = vmatpush3.msra.mxu0 %v2576_v29  ;;  %1944 = vmatprep.mubr.f32.mxu0 %v2220_v26 }
 0x1d9   : > { %2002 = vmatprep.subr.mxu0 %v2583_v30  ;;  %1945 = vmatmul.mubr.f32.gmra.mxu0 %v2222_v53  ;;  %v1965_v27 = vpop.f32.mrf.mxu1 }
 0x1da   : > { %2235 = vtanh.f32 %v1044_v54  ;;  %2003 = vmatpush3.msra.mxu0 %v2583_v30  ;;  %v1059_v55 = vadd.f32 %v1965_v27, %v2661_v41 }
 0x1db   : > { %v2224_v28 = vpop.eup %2223  ;;  %2237 = vtanh.f32 %v1049_v51  ;;  %2004 = vmatprep.subr.mxu0 %v2590_v31  ;;  %v1053_v56 = vpop.f32.mrf.mxu1 }
 0x1dc   : > { %v2226_v57 = vpop.eup %2225  ;;  %v1054_v58 = vadd.f32 %v2661_v41, %v1053_v56  ;;  %2005 = vmatpush3.msra.mxu0 %v2590_v31  ;;  %1947 = vmatprep.mubr.f32.mxu0 %v2224_v28 }
 0x1dd   : > { %2006 = vmatprep.subr.mxu0 %v2597_v32  ;;  %1948 = vmatmul.mubr.f32.gmra.mxu0 %v2226_v57  ;;  %v1968_v29 = vpop.f32.mrf.mxu1 }
 0x1de   : > { %2239 = vtanh.f32 %v1054_v58  ;;  %2007 = vmatpush3.msra.mxu0 %v2597_v32  ;;  %v1069_v59 = vadd.f32 %v1968_v29, %v2661_v41 }
 0x1df   : > { %v2228_v30 = vpop.eup %2227  ;;  %2241 = vtanh.f32 %v1059_v55  ;;  %2008 = vmatprep.subr.mxu0 %v2604_v33  ;;  %v1063_v60 = vpop.f32.mrf.mxu1 }
 0x1e0   : > { %v2230_v61 = vpop.eup %2229  ;;  %v1064_v62 = vadd.f32 %v2661_v41, %v1063_v60  ;;  %2009 = vmatpush3.msra.mxu0 %v2604_v33  ;;  %2010 = vmatprep.mubr.f32.mxu0 %v2228_v30 }
 0x1e1   : > { %v1971_v31 = vpop.f32.mrf.mxu1  ;;  %2011 = vmatmul.mubr.f32.vlgmr.msra.gmra.mxu0 %v2230_v61  ;;  %2034 = vmatprep.subr.mxu0 %v2612_v34 }
 0x1e2   : > { %2243 = vtanh.f32 %v1064_v62  ;;  %2035 = vmatpush3.msra.mxu0 %v2612_v34  ;;  %v1079_v63 = vadd.f32 %v1971_v31, %v2661_v41 }
 0x1e3   : > { %v2232_v32 = vpop.eup %2231  ;;  %2245 = vtanh.f32 %v1069_v59  ;;  %v1073_v7 = vpop.f32.mrf.mxu1  ;;  %2036 = vmatprep.subr.mxu0 %v2617_v35 }
 0x1e4   : > { %v2234_v2 = vpop.eup %2233  ;;  %v1074_v8 = vadd.f32 %v2661_v41, %v1073_v7  ;;  %2013 = vmatprep.mubr.f32.mxu0 %v2232_v32  ;;  %2037 = vmatpush3.msra.mxu0 %v2617_v35 }
 0x1e5   : > { %v1974_v33 = vpop.f32.mrf.mxu1  ;;  %2014 = vmatmul.mubr.f32.gmra.mxu0 %v2234_v2  ;;  %2038 = vmatprep.subr.mxu0 %v2624_v36 }
 0x1e6   : > { %2247 = vtanh.f32 %v1074_v8  ;;  %2039 = vmatpush3.msra.mxu0 %v2624_v36  ;;  %v1089_v20 = vadd.f32 %v1974_v33, %v2661_v41 }
 0x1e7   : > { %v2236_v34 = vpop.eup %2235  ;;  %2249 = vtanh.f32 %v1079_v63  ;;  %v1083_v21 = vpop.f32.mrf.mxu1  ;;  %2040 = vmatprep.subr.mxu0 %v2631_v37 }
 0x1e8   : > { %v2238_v1 = vpop.eup %2237  ;;  %v1084_v3 = vadd.f32 %v2661_v41, %v1083_v21  ;;  %2016 = vmatprep.mubr.f32.mxu0 %v2236_v34  ;;  %2041 = vmatpush3.msra.mxu0 %v2631_v37 }
 0x1e9   : > { %v1977_v35 = vpop.f32.mrf.mxu1  ;;  %2017 = vmatmul.mubr.f32.gmra.mxu0 %v2238_v1  ;;  %2042 = vmatprep.subr.mxu0 %v2638_v38 }
 0x1ea   : > { %2251 = vtanh.f32 %v1084_v3  ;;  %2043 = vmatpush3.msra.mxu0 %v2638_v38  ;;  %v1099_v4 = vadd.f32 %v1977_v35, %v2661_v41 }
 0x1eb   : > { %v2240_v36 = vpop.eup %2239  ;;  %2253 = vtanh.f32 %v1089_v20  ;;  %v1093_v22 = vpop.f32.mrf.mxu1  ;;  %2044 = vmatprep.subr.mxu0 %v2645_v39 }
 0x1ec   : > { %v2242_v23 = vpop.eup %2241  ;;  %v1094_v24 = vadd.f32 %v2661_v41, %v1093_v22  ;;  %2019 = vmatprep.mubr.f32.mxu0 %v2240_v36  ;;  %2045 = vmatpush3.msra.mxu0 %v2645_v39 }
 0x1ed   : > { %2020 = vmatmul.mubr.f32.gmra.mxu0 %v2242_v23  ;;  %2046 = vmatprep.subr.mxu0 %v2652_v40 }
 0x1ee   : > { %2255 = vtanh.f32 %v1094_v24  ;;  %2047 = vmatpush3.msra.mxu0 %v2652_v40 }
 0x1ef   : > { %v2244_v37 = vpop.eup %2243  ;;  %2257 = vtanh.f32 %v1099_v4  ;;  %2048 = vmatprep.subr.mxu0 %v2731_v9 }
 0x1f0   : > { %v2246_v38 = vpop.eup %2245  ;;  %2022 = vmatprep.mubr.f32.mxu0 %v2244_v37  ;;  %2049 = vmatpush3.msra.mxu0 %v2731_v9 }
 0x1f1   : > { %2023 = vmatmul.mubr.f32.gmra.mxu0 %v2246_v38  ;;  %2050 = vmatprep.subr.mxu0 %v2739_v11 }
 0x1f2   : > { %2051 = vmatpush3.msra.mxu0 %v2739_v11 }
 0x1f3   : > { %v2248_v39 = vpop.eup %2247  ;;  %2052 = vmatprep.subr.mxu0 %v2748_v13 }
 0x1f4   : > { %v2250_v41 = vpop.eup %2249  ;;  %2025 = vmatprep.mubr.f32.mxu0 %v2248_v39  ;;  %2053 = vmatpush3.msra.mxu0 %v2748_v13 }
 0x1f5   : > { %2026 = vmatmul.mubr.f32.gmra.mxu0 %v2250_v41  ;;  %2054 = vmatprep.subr.mxu0 %v2757_v14 }
 0x1f6   : > { %2055 = vmatpush3.msra.mxu0 %v2757_v14  ;;  %v2916_v14 = vld [vmem:[%s3057_s6] ss:$0 sm:$0xff] }
 0x1f7   : > { %v2252_v40 = vpop.eup %2251  ;;  %2056 = vmatprep.subr.mxu0 %v2766_v15 }
 0x1f8   : > { %v2254_v9 = vpop.eup %2253  ;;  %2028 = vmatprep.mubr.f32.mxu0 %v2252_v40  ;;  %2057 = vmatpush3.msra.mxu0 %v2766_v15 }
 0x1f9   : > { %2029 = vmatmul.mubr.f32.gmra.mxu0 %v2254_v9  ;;  %2058 = vmatprep.subr.mxu0 %v2775_v16 }
 0x1fa   : > { %2059 = vmatpush3.msra.mxu0 %v2775_v16 }
 0x1fb   : > { %v2256_v11 = vpop.eup %2255  ;;  %2060 = vmatprep.subr.mxu0 %v2784_v0 }
 0x1fc   : > { %v2258_v13 = vpop.eup %2257  ;;  %2031 = vmatprep.mubr.f32.mxu0 %v2256_v11  ;;  %2061 = vmatpush3.msra.mxu0 %v2784_v0 }
 0x1fd   : > { %2032 = vmatmul.mubr.f32.gmra.mxu0 %v2258_v13  ;;  %2062 = vmatprep.subr.mxu0 %v2793_v17 }
 0x1fe   : > { %2063 = vmatpush3.msra.mxu0 %v2793_v17 }
 0x1ff   : > { %2064 = vmatprep.subr.mxu0 %v2802_v18 }
 0x200   : > { %2065 = vmatpush3.msra.mxu0 %v2802_v18 }
 0x281   : > { %v1928_v15 = vpop.f32.mrf.mxu0 }
 0x282   : > { %v794_v16 = vadd.f32 %v1928_v15, %v2916_v14 }
 0x283   : > { %v788_v0 = vpop.f32.mrf.mxu0 }
 0x284   : > { %868 = vst [vmem:[%s2919_s9 + $0x8] sm:$0xff] %v794_v16  ;;  %v789_v17 = vadd.f32 %v2916_v14, %v788_v0 }
 0x285   : > { %v1931_v18 = vpop.f32.mrf.mxu0 }
 0x286   : > { %867 = vst [vmem:[%s2919_s9] sm:$0xff] %v789_v17  ;;  %v804_v42 = vadd.f32 %v1931_v18, %v2916_v14 }
 0x287   : > { %v798_v5 = vpop.f32.mrf.mxu0 }
 0x288   : > { %870 = vst [vmem:[%s2919_s9 + $0x18] sm:$0xff] %v804_v42  ;;  %v799_v6 = vadd.f32 %v2916_v14, %v798_v5 }
 0x289   : > { %v1934_v43 = vpop.f32.mrf.mxu0 }
 0x28a   : > { %869 = vst [vmem:[%s2919_s9 + $0x10] sm:$0xff] %v799_v6  ;;  %v814_v44 = vadd.f32 %v1934_v43, %v2916_v14 }
 0x28b   : > { %v808_v45 = vpop.f32.mrf.mxu0 }
 0x28c   : > { %872 = vst [vmem:[%s2919_s9 + $0x28] sm:$0xff] %v814_v44  ;;  %v809_v46 = vadd.f32 %v2916_v14, %v808_v45 }
 0x28d   : > { %v1937_v10 = vpop.f32.mrf.mxu0 }
 0x28e   : > { %871 = vst [vmem:[%s2919_s9 + $0x20] sm:$0xff] %v809_v46  ;;  %v824_v12 = vadd.f32 %v1937_v10, %v2916_v14 }
 0x28f   : > { %v818_v47 = vpop.f32.mrf.mxu0 }
 0x290   : > { %874 = vst [vmem:[%s2919_s9 + $0x38] sm:$0xff] %v824_v12  ;;  %v819_v48 = vadd.f32 %v2916_v14, %v818_v47 }
 0x291   : > { %v1940_v49 = vpop.f32.mrf.mxu0 }
 0x292   : > { %873 = vst [vmem:[%s2919_s9 + $0x30] sm:$0xff] %v819_v48  ;;  %v834_v50 = vadd.f32 %v1940_v49, %v2916_v14 }
 0x293   : > { %v828_v25 = vpop.f32.mrf.mxu0 }
 0x294   : > { %876 = vst [vmem:[%s2919_s9 + $0x48] sm:$0xff] %v834_v50  ;;  %v829_v26 = vadd.f32 %v2916_v14, %v828_v25 }
 0x295   : > { %v1943_v51 = vpop.f32.mrf.mxu0 }
 0x296   : > { %875 = vst [vmem:[%s2919_s9 + $0x40] sm:$0xff] %v829_v26  ;;  %v844_v52 = vadd.f32 %v1943_v51, %v2916_v14 }
 0x297   : > { %v838_v53 = vpop.f32.mrf.mxu0 }
 0x298   : > { %878 = vst [vmem:[%s2919_s9 + $0x58] sm:$0xff] %v844_v52  ;;  %v839_v54 = vadd.f32 %v2916_v14, %v838_v53 }
 0x299   : > { %v1946_v27 = vpop.f32.mrf.mxu0 }
 0x29a   : > { %877 = vst [vmem:[%s2919_s9 + $0x50] sm:$0xff] %v839_v54  ;;  %v854_v28 = vadd.f32 %v1946_v27, %v2916_v14 }
 0x29b   : > { %v848_v55 = vpop.f32.mrf.mxu0 }
 0x29c   : > { %880 = vst [vmem:[%s2919_s9 + $0x68] sm:$0xff] %v854_v28  ;;  %v849_v56 = vadd.f32 %v2916_v14, %v848_v55 }
 0x29d   : > { %v1949_v57 = vpop.f32.mrf.mxu0 }
 0x29e   : > { %879 = vst [vmem:[%s2919_s9 + $0x60] sm:$0xff] %v849_v56  ;;  %v864_v58 = vadd.f32 %v1949_v57, %v2916_v14 }
 0x29f   : > { %v858_v29 = vpop.f32.mrf.mxu0 }
 0x2a0   : > { %882 = vst [vmem:[%s2919_s9 + $0x78] sm:$0xff] %v864_v58  ;;  %v859_v30 = vadd.f32 %v2916_v14, %v858_v29 }
 0x2a1   : > { %v2012_v59 = vpop.f32.mrf.mxu0 }
 0x2a2   : > { %881 = vst [vmem:[%s2919_s9 + $0x70] sm:$0xff] %v859_v30  ;;  %v1213_v60 = vadd.f32 %v2012_v59, %v2813_v19 }
 0x2a3   : > { %v1207_v61 = vpop.f32.mrf.mxu0 }
 0x2a4   : > { %v1208_v62 = vadd.f32 %v2813_v19, %v1207_v61 }
 0x2a5   : > { %v2015_v31 = vpop.f32.mrf.mxu0 }
 0x2a6   : > { %2259 = vtanh.f32 %v1208_v62  ;;  %v1223_v32 = vadd.f32 %v2015_v31, %v2813_v19 }
 0x2a7   : > { %2261 = vtanh.f32 %v1213_v60  ;;  %v1217_v63 = vpop.f32.mrf.mxu0 }
 0x2a8   : > { %v1218_v7 = vadd.f32 %v2813_v19, %v1217_v63 }
 0x2a9   : > { %v2018_v2 = vpop.f32.mrf.mxu0 }
 0x2aa   : > { %2263 = vtanh.f32 %v1218_v7  ;;  %v1233_v8 = vadd.f32 %v2018_v2, %v2813_v19 }
 0x2ab   : > { %2265 = vtanh.f32 %v1223_v32  ;;  %v1227_v33 = vpop.f32.mrf.mxu0 }
 0x2ac   : > { %v1228_v34 = vadd.f32 %v2813_v19, %v1227_v33 }
 0x2ad   : > { %v2021_v20 = vpop.f32.mrf.mxu0 }
 0x2ae   : > { %2267 = vtanh.f32 %v1228_v34  ;;  %v1243_v21 = vadd.f32 %v2021_v20, %v2813_v19 }
 0x2af   : > { %2269 = vtanh.f32 %v1233_v8  ;;  %v1237_v1 = vpop.f32.mrf.mxu0 }
 0x2b0   : > { %v1238_v3 = vadd.f32 %v2813_v19, %v1237_v1 }
 0x2b1   : > { %v2024_v35 = vpop.f32.mrf.mxu0 }
 0x2b2   : > { %2271 = vtanh.f32 %v1238_v3  ;;  %v1253_v4 = vadd.f32 %v2024_v35, %v2813_v19 }
 0x2b3   : > { %v2260_v36 = vpop.eup %2259  ;;  %2273 = vtanh.f32 %v1243_v21  ;;  %v1247_v22 = vpop.f32.mrf.mxu0 }
 0x2b4   : > { %v2262_v23 = vpop.eup %2261  ;;  %v1248_v24 = vadd.f32 %v2813_v19, %v1247_v22  ;;  %2066 = vmatprep.mubr.f32.mxu0 %v2260_v36 }
 0x2b5   : > { %v2027_v37 = vpop.f32.mrf.mxu0  ;;  %2067 = vmatmul.mubr.f32.vlgmr.msra.gmra.mxu0 %v2262_v23 }
 0x2b6   : > { %2275 = vtanh.f32 %v1248_v24  ;;  %v1263_v39 = vadd.f32 %v2027_v37, %v2813_v19 }
 0x2b7   : > { %v2264_v38 = vpop.eup %2263  ;;  %2277 = vtanh.f32 %v1253_v4  ;;  %v1257_v41 = vpop.f32.mrf.mxu0 }
 0x2b8   : > { %v2266_v40 = vpop.eup %2265  ;;  %v1258_v9 = vadd.f32 %v2813_v19, %v1257_v41  ;;  %2069 = vmatprep.mubr.f32.mxu0 %v2264_v38 }
 0x2b9   : > { %v2030_v11 = vpop.f32.mrf.mxu0  ;;  %2070 = vmatmul.mubr.f32.gmra.mxu0 %v2266_v40 }
 0x2ba   : > { %2279 = vtanh.f32 %v1258_v9  ;;  %v1273_v15 = vadd.f32 %v2030_v11, %v2813_v19 }
 0x2bb   : > { %v2268_v13 = vpop.eup %2267  ;;  %2281 = vtanh.f32 %v1263_v39  ;;  %v1267_v16 = vpop.f32.mrf.mxu0 }
 0x2bc   : > { %v2270_v0 = vpop.eup %2269  ;;  %v1268_v17 = vadd.f32 %v2813_v19, %v1267_v16  ;;  %2072 = vmatprep.mubr.f32.mxu0 %v2268_v13 }
 0x2bd   : > { %v2033_v18 = vpop.f32.mrf.mxu0  ;;  %2073 = vmatmul.mubr.f32.gmra.mxu0 %v2270_v0 }
 0x2be   : > { %2283 = vtanh.f32 %v1268_v17  ;;  %v1283_v5 = vadd.f32 %v2033_v18, %v2813_v19 }
 0x2bf   : > { %v2272_v42 = vpop.eup %2271  ;;  %2285 = vtanh.f32 %v1273_v15  ;;  %v1277_v6 = vpop.f32.mrf.mxu0 }
 0x2c0   : > { %v2274_v43 = vpop.eup %2273  ;;  %v1278_v44 = vadd.f32 %v2813_v19, %v1277_v6  ;;  %2075 = vmatprep.mubr.f32.mxu1 %v2272_v42 }
 0x2c1   : > { %2076 = vmatmul.mubr.f32.vlgmr.msra.gmra.mxu1 %v2274_v43 }
 0x2c2   : > { %2287 = vtanh.f32 %v1278_v44 }
 0x2c3   : > { %v2276_v45 = vpop.eup %2275  ;;  %2289 = vtanh.f32 %v1283_v5 }
 0x2c4   : > { %v2278_v46 = vpop.eup %2277  ;;  %2078 = vmatprep.mubr.f32.mxu1 %v2276_v45 }
 0x2c5   : > { %2079 = vmatmul.mubr.f32.gmra.mxu1 %v2278_v46 }
 0x2c7   : > { %v2280_v10 = vpop.eup %2279 }
 0x2c8   : > { %v2282_v12 = vpop.eup %2281  ;;  %2081 = vmatprep.mubr.f32.mxu1 %v2280_v10 }
 0x2c9   : > { %2082 = vmatmul.mubr.f32.gmra.mxu1 %v2282_v12 }
 0x2cb   : > { %v2284_v47 = vpop.eup %2283 }
 0x2cc   : > { %v2286_v48 = vpop.eup %2285  ;;  %2084 = vmatprep.mubr.f32.mxu1 %v2284_v47 }
 0x2cd   : > { %2085 = vmatmul.mubr.f32.gmra.mxu1 %v2286_v48 }
 0x2cf   : > { %v2288_v19 = vpop.eup %2287 }
 0x2d0   : > { %v2290_v49 = vpop.eup %2289  ;;  %2087 = vmatprep.mubr.f32.mxu1 %v2288_v19 }
 0x2d1   : > { %2088 = vmatmul.mubr.f32.gmra.mxu1 %v2290_v49 }
 0x375   : > { %v2068_v50 = vpop.f32.mrf.mxu0 }
 0x376   : > { %v1397_v25 = vadd.f32 %v2068_v50, %v2916_v14 }
 0x377   : > { %v1391_v26 = vpop.f32.mrf.mxu0 }
 0x378   : > { %1625 = vst [vmem:[%s2919_s9 + $0x88] sm:$0xff] %v1397_v25  ;;  %v1392_v51 = vadd.f32 %v2916_v14, %v1391_v26 }
 0x379   : > { %v2071_v52 = vpop.f32.mrf.mxu0 }
 0x37a   : > { %1624 = vst [vmem:[%s2919_s9 + $0x80] sm:$0xff] %v1392_v51  ;;  %v1407_v53 = vadd.f32 %v2071_v52, %v2916_v14 }
 0x37b   : > { %v1401_v54 = vpop.f32.mrf.mxu0 }
 0x37c   : > { %1627 = vst [vmem:[%s2919_s9 + $0x98] sm:$0xff] %v1407_v53  ;;  %v1402_v27 = vadd.f32 %v2916_v14, %v1401_v54 }
 0x37d   : > { %v2074_v28 = vpop.f32.mrf.mxu0 }
 0x37e   : > { %1626 = vst [vmem:[%s2919_s9 + $0x90] sm:$0xff] %v1402_v27  ;;  %v1417_v55 = vadd.f32 %v2074_v28, %v2916_v14 }
 0x37f   : > { %v1411_v56 = vpop.f32.mrf.mxu0 }
 0x380   : > { %1629 = vst [vmem:[%s2919_s9 + $0xa8] sm:$0xff] %v1417_v55  ;;  %v1412_v57 = vadd.f32 %v2916_v14, %v1411_v56 }
 0x381   : > { %v2077_v58 = vpop.f32.mrf.mxu1 }
 0x382   : > { %1628 = vst [vmem:[%s2919_s9 + $0xa0] sm:$0xff] %v1412_v57  ;;  %v1427_v29 = vadd.f32 %v2077_v58, %v2916_v14 }
 0x383   : > { %v1421_v30 = vpop.f32.mrf.mxu1 }
 0x384   : > { %1631 = vst [vmem:[%s2919_s9 + $0xb8] sm:$0xff] %v1427_v29  ;;  %v1422_v59 = vadd.f32 %v2916_v14, %v1421_v30 }
 0x385   : > { %v2080_v60 = vpop.f32.mrf.mxu1 }
 0x386   : > { %1630 = vst [vmem:[%s2919_s9 + $0xb0] sm:$0xff] %v1422_v59  ;;  %v1437_v61 = vadd.f32 %v2080_v60, %v2916_v14 }
 0x387   : > { %v1431_v62 = vpop.f32.mrf.mxu1 }
 0x388   : > { %1633 = vst [vmem:[%s2919_s9 + $0xc8] sm:$0xff] %v1437_v61  ;;  %v1432_v31 = vadd.f32 %v2916_v14, %v1431_v62 }
 0x389   : > { %v2083_v32 = vpop.f32.mrf.mxu1 }
 0x38a   : > { %1632 = vst [vmem:[%s2919_s9 + $0xc0] sm:$0xff] %v1432_v31  ;;  %v1447_v63 = vadd.f32 %v2083_v32, %v2916_v14 }
 0x38b   : > { %v1441_v7 = vpop.f32.mrf.mxu1 }
 0x38c   : > { %1635 = vst [vmem:[%s2919_s9 + $0xd8] sm:$0xff] %v1447_v63  ;;  %v1442_v2 = vadd.f32 %v2916_v14, %v1441_v7 }
 0x38d   : > { %v2086_v8 = vpop.f32.mrf.mxu1 }
 0x38e   : > { %1634 = vst [vmem:[%s2919_s9 + $0xd0] sm:$0xff] %v1442_v2  ;;  %v1457_v33 = vadd.f32 %v2086_v8, %v2916_v14 }
 0x38f   : > { %v1451_v34 = vpop.f32.mrf.mxu1 }
 0x390   : > { %1637 = vst [vmem:[%s2919_s9 + $0xe8] sm:$0xff] %v1457_v33  ;;  %v1452_v20 = vadd.f32 %v2916_v14, %v1451_v34 }
 0x391   : > { %v2089_v21 = vpop.f32.mrf.mxu1 }
 0x392   : > { %1636 = vst [vmem:[%s2919_s9 + $0xe0] sm:$0xff] %v1452_v20  ;;  %v1467_v1 = vadd.f32 %v2089_v21, %v2916_v14 }
 0x393   : > { %v1461_v3 = vpop.f32.mrf.mxu1 }
 0x394   : > { %1639 = vst [vmem:[%s2919_s9 + $0xf8] sm:$0xff] %v1467_v1  ;;  %v1462_v35 = vadd.f32 %v2916_v14, %v1461_v3 }
 0x396   : > { %1638 = vst [vmem:[%s2919_s9 + $0xf0] sm:$0xff] %v1462_v35 }
 0x397   : > { %2304 = shalt.err (!%p2301_p3)
}
 0x398   : > { %s2305_s22 = scalar_lea.hbm %s3002_s17, 4096  ;;  %s2309_s8 = scalar_lea.hbm %s3058_s7, 8192 }
 0x399   : > { %p2306_p4 = scmp.ne.s32.totalorder %s3002_s17, %s2305_s22  ;;  %p2310_p9 = scmp.lt.s32.totalorder %s3002_s17, %s3058_s7 }
 0x39a   : > { %p2311_p10 = scmp.lt.s32.totalorder %s2309_s8, %s2305_s22 }
 0x39b   : > { %p2307_p7 = pnand %p2306_p4, %p2434_p5 }
 0x39c   : > { %p2312_p11 = por %p2311_p10, %p2310_p9 }
 0x39d   : > { %p2308_p8 = pneg %p2307_p7 }
 0x39f   : > { %p2313_p12 = pnand %p2312_p11, %p2308_p8 }
 0x3a1   : > { %2316 = shalt.err (!%p2313_p12)
}
 0x3a2   : > { %s2354_s16 = smov 128   ;;  %s2355_s18 = smov 8  }
 0x3a3   : > { %2122 = dma.vmem_to_hbm [thread:$0]  (%p2434_p5), %s3004_s14, 4096, %s3002_s17, %s3011_s28, %s2354_s16, %s2354_s16, %s2355_s18  }
 0x3a4 PF: > { %p2128_p13 = scmp.ge.s32.totalorder %s2351_s27, 2  ;;  %s1516_s19 = sand.u32 1, %s2339_s24  }
 0x3a5   : > { %s1517_s20 = scalar_lea.sflag [#allocation3], %s1516_s19 }
 0x3a6   : > { %p2125_p0 = pnand %p2128_p13, %p2438_p6 }
 0x3a8   : > { %p2126_p1 = pneg %p2125_p0 }
 0x3aa   : > { %2334 = dma.done.wait (%p2126_p1), %s1517_s20, 4096  }
 0x3ab   : > { %2336 = vsyncadd (%p2126_p1), %s1517_s20, 4294963200  ;;  %p17_p2 = scmp.ge.s32.totalorder %s2421_s30, 4   ;;  %s3061_s24 = smov %s2343_s25 }
 0x3ac   : > { %s3062_s25 = smov %s2347_s26  ;;  %s3063_s26 = smov %s2432_s10 }
 0x3ad   : > { %s3064_s27 = smov %s2421_s30  ;;  %19 = sbr.rel (!%p17_p2) target bundleno = 3 (0x3), region = 85 }
 0x3b2   :  { %1522 = vsyncpa [#allocation3], 1 }
 0x3b3   :  { %1524 = vsyncpa [#allocation3 + $0x1], 1 }

</bundles_post_ra>
